<compile_context>
chip_gen: v6e
topology: v6e:2x2x1
jax: 0.10.0
libtpu: 0.0.40
codegen_flags: <defaults>
</compile_context>

<pallas_src>
import functools
import math

import jax
import jax.numpy as jnp
from jax.experimental import pallas as pl
from jax.experimental.pallas import tpu as pltpu


# ----------------------------------------------------------------------------
# VMEM budget / tile-size helpers
# ----------------------------------------------------------------------------
def _vmem_limit_bytes():
    """Scoped-VMEM limit: ~3/4 of physical (96 MiB on v5e/v6e, 48 MiB on v7x)."""
    try:
        cap = int(pltpu.get_tpu_info().vmem_capacity_bytes)
    except Exception:  # no device / attr missing -> assume 128 MiB part
        cap = 128 * 1024 * 1024
    return int((cap * 3) // 4)


def _pick_tile_rows(rows, per_row_bytes, vmem_limit):
    """Largest multiple-of-8 row tile whose working set fits the VMEM budget.

    `per_row_bytes` must already include double-buffering of the streamed
    operands and the f32/int32 temporaries the kernel materializes.
    """
    rows8 = ((rows + 7) // 8) * 8
    budget = (vmem_limit * 4) // 5            # ~20% headroom for compiler scratch
    tr = budget // max(per_row_bytes, 1)
    tr = min(tr, rows8)
    # For large problems keep >= 2 grid steps so v7x's two TensorCores both get
    # work; on single-TC v5e/v6e this costs one extra ~0.35 us step (nothing).
    if rows8 >= 2048:
        half = (((rows8 // 2) + 7) // 8) * 8
        tr = min(tr, half)
    tr = max((tr // 8) * 8, 8)
    return int(tr)


# ----------------------------------------------------------------------------
# Kernel 1: custom LayerNormalization  (alpha*(x-mean)/(std+eps)+bias, std N-1)
# ----------------------------------------------------------------------------
def _layernorm_kernel(alpha_ref, bias_ref, x_ref, o_ref, *, eps, n):
    alpha = alpha_ref[0]                      # scalars read once from SMEM
    bias = bias_ref[0]
    x = x_ref[...].astype(jnp.float32)
    # One-pass statistics: avoids a second (tr, hidden) f32 temporary pass.
    s1 = jnp.sum(x, axis=-1, keepdims=True)
    s2 = jnp.sum(x * x, axis=-1, keepdims=True)
    mean = s1 * (1.0 / n)
    # torch.std default is the unbiased estimator (divide by N-1)
    var = jnp.maximum((s2 - s1 * mean) * (1.0 / (n - 1)), 0.0)
    std = jnp.sqrt(var)
    scale = alpha / (std + eps)               # (tr, 1) column; exact divide
    o_ref[...] = ((x - mean) * scale + bias).astype(o_ref.dtype)


def layer_normalization(x, alpha, bias, *, eps=1e-6):
    orig_shape = x.shape
    hidden = orig_shape[-1]
    rows = math.prod(orig_shape[:-1]) if len(orig_shape) > 1 else 1
    x2d = x.reshape(rows, hidden)

    itemsize = jnp.dtype(x.dtype).itemsize
    vmem_limit = _vmem_limit_bytes()
    # double-buffered in + out (itemsize each) + ~2 f32 tile temporaries
    per_row = hidden * (4 * itemsize + 8)
    tr = _pick_tile_rows(rows, per_row, vmem_limit)
    grid = (pl.cdiv(rows, tr),)               # ragged last block handled by Pallas

    kernel = functools.partial(_layernorm_kernel, eps=float(eps), n=hidden)
    cost = pl.CostEstimate(
        flops=7 * rows * hidden,
        transcendentals=2 * rows,
        bytes_accessed=2 * rows * hidden * itemsize,
    )
    data_spec = pl.BlockSpec((tr, hidden), lambda i: (i, 0))

    out2d = pl.pallas_call(
        kernel,
        out_shape=jax.ShapeDtypeStruct((rows, hidden), x.dtype),
        grid_spec=pltpu.PrefetchScalarGridSpec(
            num_scalar_prefetch=0,
            grid=grid,
            in_specs=[
                pl.BlockSpec(memory_space=pltpu.SMEM),   # alpha (1,)
                pl.BlockSpec(memory_space=pltpu.SMEM),   # bias  (1,)
                data_spec,                               # x
            ],
            out_specs=data_spec,
        ),
        compiler_params=pltpu.CompilerParams(
            dimension_semantics=("parallel",),
            vmem_limit_bytes=vmem_limit,
        ),
        cost_estimate=cost,
    )(alpha.astype(jnp.float32), bias.astype(jnp.float32), x2d)
    return out2d.reshape(orig_shape)


# ----------------------------------------------------------------------------
# Portable in-kernel counter-based PRNG (int32 only; works on TPU + interpret)
# ----------------------------------------------------------------------------
_M1 = 0x7FEB352D                         # lowbias32 avalanche constants
_M2 = 0x846CA68B - (1 << 32)             # as signed int32
_GOLD = 0x9E3779B9 - (1 << 32)           # golden-ratio seed mixer (signed)


def _srl32(x, n):
    """Logical right shift on int32 (arithmetic shift + mask; no unsigned ops)."""
    return (x >> n) & jnp.int32((1 << (32 - n)) - 1)


def _hash_i32(x):
    """lowbias32-style mixer entirely in int32 (int mul wraps mod 2^32)."""
    x = x ^ _srl32(x, 16)
    x = x * jnp.int32(_M1)
    x = x ^ _srl32(x, 15)
    x = x * jnp.int32(_M2)
    x = x ^ _srl32(x, 16)
    return x


# ----------------------------------------------------------------------------
# Kernel 2: fused residual add (+ dropout) :  out = x + dropout(y)
# ----------------------------------------------------------------------------
def _residual_add_kernel(x_ref, y_ref, o_ref):
    o_ref[...] = x_ref[...] + y_ref[...]


def _residual_dropout_kernel(seed_ref, x_ref, y_ref, o_ref, *, rate):
    tr, h = x_ref.shape
    row0 = pl.program_id(0) * tr
    rows = jax.lax.broadcasted_iota(jnp.int32, (tr, h), 0) + row0
    cols = jax.lax.broadcasted_iota(jnp.int32, (tr, h), 1)
    elem = rows * jnp.int32(h) + cols                 # global element id (wraps: ok)
    bits = _hash_i32(elem ^ (seed_ref[0] * jnp.int32(_GOLD)))
    # bits ~ Uniform[-2^31, 2^31): drop iff bits < thr  ->  P(drop) = rate
    thr = jnp.int32(min(int(rate * 4294967296.0), 4294967295) - 2147483648)
    keep = bits >= thr
    y = y_ref[...]
    scale = jnp.asarray(1.0 / (1.0 - rate), dtype=y.dtype)
    o_ref[...] = x_ref[...] + jnp.where(keep, y * scale, jnp.zeros_like(y))


def _fused_residual_dropout(x, y, *, dropout_rate, seed):
    orig_shape = x.shape
    hidden = orig_shape[-1]
    rows = math.prod(orig_shape[:-1]) if len(orig_shape) > 1 else 1
    x2d = x.reshape(rows, hidden)
    y2d = y.reshape(rows, hidden).astype(x.dtype)

    itemsize = jnp.dtype(x.dtype).itemsize
    vmem_limit = _vmem_limit_bytes()
    # double-buffered x + y + out (itemsize each) + mask/iota/scaled temporaries
    per_row = hidden * (6 * itemsize + 12)
    tr = _pick_tile_rows(rows, per_row, vmem_limit)
    grid = (pl.cdiv(rows, tr),)

    data_spec = pl.BlockSpec((tr, hidden), lambda i: (i, 0))
    cost = pl.CostEstimate(
        flops=3 * rows * hidden,
        transcendentals=0,
        bytes_accessed=3 * rows * hidden * itemsize,
    )
    common = dict(
        out_shape=jax.ShapeDtypeStruct((rows, hidden), x.dtype),
        compiler_params=pltpu.CompilerParams(
            dimension_semantics=("parallel",),
            vmem_limit_bytes=vmem_limit,
        ),
        cost_estimate=cost,
    )

    if dropout_rate <= 0.0:
        out2d = pl.pallas_call(
            _residual_add_kernel,
            grid_spec=pltpu.PrefetchScalarGridSpec(
                num_scalar_prefetch=0,
                grid=grid,
                in_specs=[data_spec, data_spec],
                out_specs=data_spec,
            ),
            input_output_aliases={1: 0},      # y is dead after the add
            **common,
        )(x2d, y2d)
    else:
        kernel = functools.partial(_residual_dropout_kernel, rate=float(dropout_rate))
        seed_arr = jnp.asarray([seed], dtype=jnp.int32)
        out2d = pl.pallas_call(
            kernel,
            grid_spec=pltpu.PrefetchScalarGridSpec(
                num_scalar_prefetch=0,
                grid=grid,
                in_specs=[
                    pl.BlockSpec(memory_space=pltpu.SMEM),   # seed (1,)
                    data_spec,                                # x (residual)
                    data_spec,                                # y = sublayer(norm(x))
                ],
                out_specs=data_spec,
            ),
            input_output_aliases={2: 0},      # y is dead after the fused epilogue
            **common,
        )(seed_arr, x2d, y2d)

    return out2d.reshape(orig_shape)


# ----------------------------------------------------------------------------
# ResidualConnection forward: x + dropout(sublayer(norm(x)))
# ----------------------------------------------------------------------------
def residual_connection(x, sublayer, *, alpha, bias, dropout_rate=0.0,
                        eps=1e-6, seed=0):
    # TODO(synk): `sublayer` is an arbitrary user callable (as in the PyTorch
    # module); it runs as plain JAX between the two Pallas kernels. A fused
    # matmul + residual/dropout-epilogue fast path is possible when the
    # sublayer is a known matmul, but is not implemented for the generic case.
    y = sublayer(layer_normalization(x, alpha, bias, eps=eps))
    return _fused_residual_dropout(x, y, dropout_rate=dropout_rate, seed=seed)


# ----------------------------------------------------------------------------
# Demo / self-check
# ----------------------------------------------------------------------------
if __name__ == "__main__":
    key = jax.random.PRNGKey(0)
    batch, seq, hidden = 2, 8, 128          # lane-dense last dim (multiple of 128)
    kx, kw = jax.random.split(key)
    x = jax.random.normal(kx, (batch, seq, hidden), dtype=jnp.float32)

    # LayerNormalization params: nn.Parameter(torch.ones([1])/zeros([1]))
    alpha = jnp.ones((1,), dtype=jnp.float32)
    bias = jnp.zeros((1,), dtype=jnp.float32)
    eps = 1e-6

    # A simple deterministic stand-in for the arbitrary `sublayer` callable.
    w = jax.random.normal(kw, (hidden, hidden), dtype=jnp.float32) * 0.02
    sublayer = lambda t: jnp.tanh(t @ w)

    # ---- eval mode (dropout inactive): exact check vs pure-JAX reference ----
    out = residual_connection(x, sublayer, alpha=alpha, bias=bias,
                              dropout_rate=0.0, eps=eps)
    out = jax.block_until_ready(out)

    mean = jnp.mean(x, axis=-1, keepdims=True)
    std = jnp.std(x, axis=-1, keepdims=True, ddof=1)   # torch.std default (unbiased)
    normed = alpha[0] * (x - mean) / (std + eps) + bias[0]
    ref = x + sublayer(normed)

    assert out.shape == x.shape
    assert jnp.allclose(out, ref, atol=2e-3, rtol=2e-3), "mismatch vs reference"

    # ---- training mode (dropout active): structural check -------------------
    rate = 0.5
    out_d = residual_connection(x, sublayer, alpha=alpha, bias=bias,
                                dropout_rate=rate, eps=eps, seed=1234)
    out_d = jax.block_until_ready(out_d)
    assert bool(jnp.all(jnp.isfinite(out_d)))

    y_k = sublayer(layer_normalization(x, alpha, bias, eps=eps))
    scaled = y_k / (1.0 - rate)
    diff = out_d - x
    is_zero = jnp.abs(diff) <= 1e-5
    is_kept = jnp.abs(diff - scaled) <= 1e-4 + 1e-4 * jnp.abs(scaled)
    assert bool(jnp.all(is_zero | is_kept)), "dropout pattern mismatch"
    frac_dropped = jnp.mean((diff == 0.0).astype(jnp.float32))
    assert 0.2 < float(frac_dropped) < 0.8, "dropout rate implausible"

    print("KERNEL_OK")
</pallas_src>

<mosaic_0001>
module attributes {stable_mosaic.version = 11 : i64} {
  func.func @_layernorm_kernel(%arg0: i32, %arg1: memref<1xf32, #tpu.memory_space<smem>>, %arg2: memref<1xf32, #tpu.memory_space<smem>>, %arg3: memref<16x128xf32, #tpu.memory_space<vmem>>, %arg4: memref<16x128xf32, #tpu.memory_space<vmem>>) attributes {dimension_semantics = [#tpu.dimension_semantics<parallel>], iteration_bounds = array<i64: 1>, scalar_prefetch = 0 : i64, scratch_operands = 0 : i64, tpu.core_type = #tpu.core_type<tc>, window_params = [{transform_indices = @transform_0, window_bounds = array<i64: 1>}, {transform_indices = @transform_1, window_bounds = array<i64: 1>}, {transform_indices = @transform_2, window_bounds = array<i64: 16, 128>}, {transform_indices = @transform_3, window_bounds = array<i64: 16, 128>}]} {
    %c0 = arith.constant 0 : index
    %0 = memref.load %arg1[%c0] : memref<1xf32, #tpu.memory_space<smem>>
    %c0_0 = arith.constant 0 : index
    %1 = memref.load %arg2[%c0_0] : memref<1xf32, #tpu.memory_space<smem>>
    %c0_1 = arith.constant 0 : index
    %c0_2 = arith.constant 0 : index
    %2 = vector.load %arg3[%c0_1, %c0_2] : memref<16x128xf32, #tpu.memory_space<vmem>>, vector<16x128xf32>
    %cst = arith.constant dense<0.000000e+00> : vector<16xf32>
    %3 = vector.multi_reduction <add>, %2, %cst [1] : vector<16x128xf32> to vector<16xf32>
    %4 = vector.shape_cast %3 : vector<16xf32> to vector<16x1xf32>
    %5 = arith.mulf %2, %2 : vector<16x128xf32>
    %cst_3 = arith.constant dense<0.000000e+00> : vector<16xf32>
    %6 = vector.multi_reduction <add>, %5, %cst_3 [1] : vector<16x128xf32> to vector<16xf32>
    %7 = vector.shape_cast %6 : vector<16xf32> to vector<16x1xf32>
    %cst_4 = arith.constant 7.812500e-03 : f32
    %8 = vector.broadcast %cst_4 : f32 to vector<16x1xf32>
    %9 = arith.mulf %4, %8 : vector<16x1xf32>
    %10 = arith.mulf %4, %9 : vector<16x1xf32>
    %11 = arith.subf %7, %10 : vector<16x1xf32>
    %cst_5 = arith.constant 0.00787401571 : f32
    %12 = vector.broadcast %cst_5 : f32 to vector<16x1xf32>
    %13 = arith.mulf %11, %12 : vector<16x1xf32>
    %cst_6 = arith.constant 0.000000e+00 : f32
    %14 = vector.broadcast %cst_6 : f32 to vector<16x1xf32>
    %15 = arith.maximumf %13, %14 : vector<16x1xf32>
    %16 = math.sqrt %15 : vector<16x1xf32>
    %cst_7 = arith.constant 9.99999997E-7 : f32
    %17 = vector.broadcast %cst_7 : f32 to vector<16x1xf32>
    %18 = arith.addf %16, %17 : vector<16x1xf32>
    %19 = vector.broadcast %0 : f32 to vector<16x1xf32>
    %20 = arith.divf %19, %18 : vector<16x1xf32>
    %21 = vector.broadcast %9 : vector<16x1xf32> to vector<16x128xf32>
    %22 = arith.subf %2, %21 : vector<16x128xf32>
    %23 = vector.broadcast %20 : vector<16x1xf32> to vector<16x128xf32>
    %24 = arith.mulf %22, %23 : vector<16x128xf32>
    %25 = vector.broadcast %1 : f32 to vector<16x128xf32>
    %26 = arith.addf %24, %25 : vector<16x128xf32>
    %c0_8 = arith.constant 0 : index
    %c0_9 = arith.constant 0 : index
    %27 = vector.load %arg4[%c0_8, %c0_9] : memref<16x128xf32, #tpu.memory_space<vmem>>, vector<16x128xf32>
    tpu.vector_store %arg4[%c0_8, %c0_9], %26 {strides = array<i32>} : memref<16x128xf32, #tpu.memory_space<vmem>>, vector<16x128xf32>,
    return
  }
  func.func @transform_0(%arg0: i32) -> i32 {
    %c0_i32 = arith.constant 0 : i32
    %c0_i32_0 = arith.constant 0 : i32
    return %c0_i32 : i32
  }
  func.func @transform_1(%arg0: i32) -> i32 {
    %c0_i32 = arith.constant 0 : i32
    %c0_i32_0 = arith.constant 0 : i32
    return %c0_i32 : i32
  }
  func.func @transform_2(%arg0: i32) -> (i32, i32) {
    %c0_i32 = arith.constant 0 : i32
    %c0_i32_0 = arith.constant 0 : i32
    return %arg0, %c0_i32 : i32, i32
  }
  func.func @transform_3(%arg0: i32) -> (i32, i32) {
    %c0_i32 = arith.constant 0 : i32
    %c0_i32_0 = arith.constant 0 : i32
    return %arg0, %c0_i32 : i32, i32
  }
}

</mosaic_0001>

<bundles_post_ra>
// kernel: tpu_custom_call.1
= control target key start
LH: loop header
LB: loop body
LE: loop exit
PB: predicated region body
PF: predicated region fallthrough
CT: control target
= control target key end

     0   :  { %10 = vsyncpa [#allocation5], 0  ;;  %s200_s0 = inlined_call_operand.<no memory space> [shape: f32[1], index: 0, kind: input, shape index: {}]   ;;  %s201_s1 = inlined_call_operand.<no memory space> [shape: f32[1], index: 1, kind: input, shape index: {}]   ;;  %s202_s2 = inlined_call_operand.hbm [shape: f32[16,128], index: 2, kind: input, shape index: {}]   ;;  %s203_s3 = inlined_call_operand.hbm [shape: f32[16,128], index: 3, kind: output, shape index: {}]  }
   0x1   :  { %11 = vsyncpa [#allocation6], 0  ;;  %s158_s12 = smov [#allocation4]  }
   0x2   :  { %s21_s13 = sshll.u32 %s158_s12, 4  ;;  %s22_s13 = int_to_ptr.vmem [resolvable:$true] %s21_s13 }
   0x3   :  { %s122_s14 = scalar_lea.vmem %s22_s13, 256  ;;  %p127_p1 = scmp.lt.s32.totalorder %s22_s13, %s22_s13 }
   0x4   :  { %p123_p0 = scmp.ne.s32.totalorder %s22_s13, %s122_s14  ;;  %p128_p2 = scmp.lt.s32.totalorder %s122_s14, %s122_s14 }
   0x6   :  { %p129_p3 = por %p128_p2, %p127_p1 }
   0x8   :  { %p130_p4 = pnand %p129_p3, %p123_p0 }
   0xa   :  { %133 = shalt.err (!%p130_p4)
}
   0xb   :  { %s159_s15 = smov 128   ;;  %s160_s16 = smov 8  }
   0xc   :  { %27 = dma.hbm_to_vmem [thread:$0]  %s202_s2, 256, %s22_s13, [#allocation5], %s159_s15, %s159_s15, %s160_s16  }
   0xd   :  { %154 = dma.done.wait [#allocation5], 256  }
   0xe   :  { %155 = vsyncadd [#allocation5], 4294967040  ;;  %v33_v0 = vld [vmem:[#allocation4] sm:$0xff]  ;;  %v34_v2 = vld [vmem:[#allocation4 + $0x8] sm:$0xff]  ;;  %v71_v30 = vstv %s200_s0  ;;  %v80_v34 = vstv %s201_s1  ;;  %s161_s22 = smov [#allocation7]  }
   0xf   :  { %35 = vadd.xlane.f32.xlu0 %v33_v0  ;;  %v39_v1 = vmul.f32 %v33_v0, %v33_v0  ;;  %v40_v3 = vmul.f32 %v34_v2, %v34_v2  ;;  %s90_s23 = sshll.u32 %s161_s22, 4  ;;  %s91_s23 = int_to_ptr.vmem [resolvable:$true] %s90_s23 }
  0x10   :  { %s134_s0 = scalar_lea.vmem %s91_s23, 256  ;;  %p139_p6 = scmp.lt.s32.totalorder %s91_s23, %s91_s23 }
  0x11   :  { %41 = vadd.xlane.f32.xlu1 %v39_v1  ;;  %p135_p5 = scmp.ne.s32.totalorder %s91_s23, %s134_s0  ;;  %p140_p7 = scmp.lt.s32.totalorder %s134_s0, %s134_s0 }
  0x13   :  { %37 = vadd.xlane.f32.xlu0 %v34_v2  ;;  %p141_p8 = por %p140_p7, %p139_p6 }
  0x15   :  { %43 = vadd.xlane.f32.xlu1 %v40_v3  ;;  %p142_p9 = pnand %p141_p8, %p135_p5 }
  0x98   :  { %v36_v4 = vpop.xlane.xlu0 %35 }
  0x99   :  { %v45_v5 = vmul.f32 0.0078125, %v36_v4 }
  0x9a   :  { %v42_v6 = vpop.xlane.xlu1 %41 }
  0x9b   :  { %v47_v7 = vmul.f32 %v45_v5, %v36_v4  ;;  %v76_v32 = vsub.f32 %v33_v0, %v45_v5 }
  0x9c   :  { %v38_v8 = vpop.xlane.xlu0 %37 }
  0x9d   :  { %v46_v9 = vmul.f32 0.0078125, %v38_v8  ;;  %v49_v10 = vsub.f32 %v42_v6, %v47_v7 }
  0x9e   :  { %v44_v11 = vpop.xlane.xlu1 %43 }
  0x9f   :  { %v48_v12 = vmul.f32 %v46_v9, %v38_v8  ;;  %v51_v13 = vmul.f32 0.007874016, %v49_v10  ;;  %v77_v38 = vsub.f32 %v34_v2, %v46_v9 }
  0xa1   :  { %v53_v14 = vmax.f32 %v51_v13, 0.0  ;;  %v50_v15 = vsub.f32 %v44_v11, %v48_v12 }
  0xa3   :  { %106 = vrsqrt.f32 %v53_v14  ;;  %v52_v16 = vmul.f32 0.007874016, %v50_v15  ;;  %vm57_vm0 = vcmp.eq.f32.partialorder %v53_v14, inf  ;;  %v60_v20 = vand.u32 2147483648, %v53_v14 }
  0xa4   :  { %vm59_vm1 = vcmp.eq.f32.partialorder %v53_v14, 0.0 }
  0xa5   :  { %v54_v17 = vmax.f32 %v52_v16, 0.0 }
  0xa7   :  { %108 = vrsqrt.f32 %v54_v17  ;;  %vm64_vm2 = vcmp.eq.f32.partialorder %v54_v17, inf  ;;  %v67_v26 = vand.u32 2147483648, %v54_v17  ;;  %vm66_vm3 = vcmp.eq.f32.partialorder %v54_v17, 0.0 }
  0xb0   :  { %v107_v18 = vpop.eup %106 }
  0xb1   :  { %v56_v19 = vmul.f32 %v107_v18, %v53_v14 }
  0xb3   :  { %v58_v21 = vsel %vm57_vm0, %v53_v14, %v56_v19 }
  0xb4   :  { %v61_v22 = vsel %vm59_vm1, %v60_v20, %v58_v21  ;;  %v109_v23 = vpop.eup %108 }
  0xb5   :  { %v69_v24 = vadd.f32 1e-06, %v61_v22  ;;  %v63_v25 = vmul.f32 %v109_v23, %v54_v17 }
  0xb7   :  { %110 = vrcp.f32 %v69_v24  ;;  %v65_v27 = vsel %vm64_vm2, %v54_v17, %v63_v25 }
  0xb8   :  { %v68_v28 = vsel %vm66_vm3, %v67_v26, %v65_v27 }
  0xb9   :  { %v70_v29 = vadd.f32 1e-06, %v68_v28 }
  0xbb   :  { %112 = vrcp.f32 %v70_v29 }
  0xc4   :  { %v111_v31 = vpop.eup %110 }
  0xc5   :  { %v73_v33 = vmul.f32 %v111_v31, %v71_v30 }
  0xc7   :  { %v78_v35 = vmul.f32 %v76_v32, %v73_v33 }
  0xc8   :  { %v113_v36 = vpop.eup %112 }
  0xc9   :  { %v81_v37 = vadd.f32 %v80_v34, %v78_v35  ;;  %v75_v39 = vmul.f32 %v113_v36, %v71_v30 }
  0xcb   :  { %83 = vst [vmem:[#allocation7] sm:$0xff] %v81_v37  ;;  %v79_v40 = vmul.f32 %v77_v38, %v75_v39 }
  0xcd   :  { %v82_v41 = vadd.f32 %v80_v34, %v79_v40 }
  0xcf   :  { %84 = vst [vmem:[#allocation7 + $0x8] sm:$0xff] %v82_v41 }
  0xd0   :  { %145 = shalt.err (!%p142_p9)
}
  0xd1   :  { %96 = dma.vmem_to_hbm [thread:$0]  %s91_s23, 256, %s203_s3, [#allocation6], %s159_s15, %s159_s15, %s160_s16  }
  0xd2   :  { %156 = dma.done.wait [#allocation6], 256  }
  0xd3   :  { %157 = vsyncadd [#allocation6], 4294967040 }
  0xd4   :  { %100 = vsyncpa [#allocation5], 1 }
  0xd5   :  { %101 = vsyncpa [#allocation6], 1 }

</bundles_post_ra>
